<compile_context>
chip_gen: v6e
topology: v6e:2x2x1
jax: 0.10.0
libtpu: 0.0.40
codegen_flags: <defaults>
</compile_context>

<pallas_src>
import functools

import jax
import jax.numpy as jnp
from jax import lax
from jax.experimental import pallas as pl
from jax.experimental.pallas import tpu as pltpu


# ------------------------------ Pallas kernel ------------------------------ #

def _double_conv_kernel(x_ref, mask_ref, w1_ref, w2_ref, bn_ref, o_ref,
                        *, N, H, W, eps):
    """Fused Conv3x3 -> BN -> ReLU -> Conv3x3 -> BN -> ReLU (whole batch).

    x_ref    : (Cin, P) f32 activations, P = N*H*W flattened (n, h, w) in lanes
    mask_ref : (8, P)  f32 {0,1} halo-validity masks for the 8 non-center taps
    w1_ref   : (Cout, 9*Cin)  bf16 im2col weights,  col index = tap*Cin  + c
    w2_ref   : (Cout, 9*Cout) bf16 im2col weights,  col index = tap*Cout + c
    bn_ref   : (Cout, 4) f32 columns = [gamma1, beta1, gamma2, beta2]
    o_ref    : (Cout, P) f32 output (lane-dense, unmasked full-width store)
    """
    P = N * H * W
    masks = mask_ref[...]                       # (8, P)

    def im2col(x):
        # x: (C, P) f32 -> (9*C, P) bf16 patch slab (tap-major, channel-minor).
        parts = []
        mi = 0
        for dy in (-1, 0, 1):
            for dx in (-1, 0, 1):
                s = dy * W + dx                 # shift in flattened pixels
                # shifted[c, p] == x[c, p + s]; every wrapped / out-of-image
                # read lands on a masked position, so the wrap is harmless.
                shifted = x if s == 0 else pltpu.roll(x, shift=(-s) % P, axis=1)
                if (dy, dx) != (0, 0):          # center tap needs no mask
                    shifted = shifted * masks[mi:mi + 1, :]
                    mi += 1
                parts.append(shifted)
        # Cast the whole slab once; MXU operands are bf16, accumulation is f32.
        return jnp.concatenate(parts, axis=0).astype(jnp.bfloat16)

    def conv3x3(x, w_ref):
        # One MXU matmul per conv: (Cout, 9*C) x (9*C, P) -> (Cout, P) f32.
        return jnp.dot(w_ref[...], im2col(x),
                       preferred_element_type=jnp.float32)

    def bn_relu(y, gamma, beta):
        # Single-pass batch stats: var = E[y^2] - E[y]^2 (biased), then one
        # fused y*scale + shift pass before the ReLU max.  All f32.
        inv_p = 1.0 / P
        mean = jnp.sum(y, axis=1, keepdims=True) * inv_p
        ex2 = jnp.sum(y * y, axis=1, keepdims=True) * inv_p
        var = ex2 - mean * mean
        scale = gamma * lax.rsqrt(var + eps)
        shift = beta - mean * scale
        return jnp.maximum(y * scale + shift, 0.0)

    bn = bn_ref[...]                            # (Cout, 4)
    x = x_ref[...].astype(jnp.float32)
    y = bn_relu(conv3x3(x, w1_ref), bn[:, 0:1], bn[:, 1:2])
    y = bn_relu(conv3x3(y, w2_ref), bn[:, 2:3], bn[:, 3:4])
    o_ref[...] = y.astype(o_ref.dtype)


# --------------------------------- Wrapper --------------------------------- #

def double_convolution(x_nchw, params, eps=1e-5):
    """Forward pass of DoubleConvolution. Input/output layout: NCHW."""
    N, Cin, H, W = x_nchw.shape
    Cout = params["w1"].shape[-1]
    HW = H * W
    P = N * HW
    assert P % 128 == 0, "pad N*H*W to a multiple of 128 for lane-dense stores"

    # Channel-major, lane-dense activation layout: (Cin, N*H*W).
    # TODO(synk): at realistic sizes keep this layout across consecutive
    # DoubleConvolution blocks instead of transposing around every call.
    x_cf = jnp.transpose(x_nchw, (1, 0, 2, 3)).reshape(Cin, P)

    # im2col weight matrices (bf16 MXU operands), W[o, t*C + c] = w[ky,kx,c,o].
    def im2col_weights(w):
        cin, cout = w.shape[2], w.shape[3]
        return (jnp.transpose(w.reshape(9, cin, cout), (2, 0, 1))
                .reshape(cout, 9 * cin).astype(jnp.bfloat16))

    w1 = im2col_weights(params["w1"])           # (Cout, 9*Cin)
    w2 = im2col_weights(params["w2"])           # (Cout, 9*Cout)

    # All four BN parameter vectors packed into one (Cout, 4) input.
    bn = jnp.stack([params["gamma1"], params["beta1"],
                    params["gamma2"], params["beta2"]],
                   axis=1).astype(jnp.float32)

    # Host-precomputed halo-validity masks for the 8 non-center 3x3 taps,
    # matching the flattened (n, h, w) lane order (no in-kernel div/mod).
    p = jnp.arange(P, dtype=jnp.int32)
    hh = (p % HW) // W
    ww = p % W
    mask_rows = []
    for dy in (-1, 0, 1):
        for dx in (-1, 0, 1):
            if (dy, dx) == (0, 0):
                continue
            m = ((hh + dy >= 0) & (hh + dy < H) &
                 (ww + dx >= 0) & (ww + dx < W))
            mask_rows.append(m.astype(jnp.float32))
    masks = jnp.stack(mask_rows, axis=0)        # (8, P)

    vmem = pltpu.MemorySpace.VMEM
    out_cf = pl.pallas_call(
        functools.partial(_double_conv_kernel, N=N, H=H, W=W, eps=eps),
        out_shape=jax.ShapeDtypeStruct((Cout, P), jnp.float32),
        in_specs=[pl.BlockSpec(memory_space=vmem)] * 5,
        out_specs=pl.BlockSpec(memory_space=vmem),
    )(x_cf, masks, w1, w2, bn)

    return jnp.transpose(out_cf.reshape(Cout, N, H, W), (1, 0, 2, 3))


# --------------------------- Plain-JAX reference --------------------------- #

def _reference(x_nchw, params, eps=1e-5):
    def conv(x, w):
        return lax.conv_general_dilated(
            x, w, window_strides=(1, 1), padding=((1, 1), (1, 1)),
            dimension_numbers=("NHWC", "HWIO", "NHWC"))

    def bn_relu(y, g, b):
        mean = jnp.mean(y, axis=(0, 1, 2))
        var = jnp.mean((y - mean) ** 2, axis=(0, 1, 2))
        return jnp.maximum((y - mean) * lax.rsqrt(var + eps) * g + b, 0.0)

    x = jnp.transpose(x_nchw, (0, 2, 3, 1))
    y = bn_relu(conv(x, params["w1"]), params["gamma1"], params["beta1"])
    y = bn_relu(conv(y, params["w2"]), params["gamma2"], params["beta2"])
    return jnp.transpose(y, (0, 3, 1, 2))


# ----------------------------------- Main ----------------------------------- #

if __name__ == "__main__":
    N, Cin, Cout, H, W = 2, 4, 8, 16, 16

    key = jax.random.PRNGKey(0)
    kx, kw1, kw2 = jax.random.split(key, 3)

    x = jax.random.normal(kx, (N, Cin, H, W), jnp.float32)

    # Deterministic parameter init (Kaiming-uniform-like for convs; BN affine
    # parameters match nn.BatchNorm2d defaults: weight=1, bias=0).
    bound1 = 1.0 / (9 * Cin) ** 0.5
    bound2 = 1.0 / (9 * Cout) ** 0.5
    params = {
        "w1": jax.random.uniform(kw1, (3, 3, Cin, Cout), jnp.float32,
                                 -bound1, bound1),
        "gamma1": jnp.ones((Cout,), jnp.float32),
        "beta1": jnp.zeros((Cout,), jnp.float32),
        "w2": jax.random.uniform(kw2, (3, 3, Cout, Cout), jnp.float32,
                                 -bound2, bound2),
        "gamma2": jnp.ones((Cout,), jnp.float32),
        "beta2": jnp.zeros((Cout,), jnp.float32),
    }

    fwd = jax.jit(double_convolution)
    out = jax.block_until_ready(fwd(x, params))
    ref = jax.block_until_ready(_reference(x, params))

    assert out.shape == (N, Cout, H, W), out.shape
    # bf16 MXU operands (f32 accumulation) -> tolerance loosened vs. pure f32.
    assert jnp.allclose(out, ref, atol=5e-2, rtol=5e-2), "mismatch vs reference"

    print("KERNEL_OK")
</pallas_src>

<mosaic_0001>
module attributes {stable_mosaic.version = 11 : i64} {
  func.func @_double_conv_kernel(%arg0: memref<4x512xf32, #tpu.memory_space<vmem>>, %arg1: memref<8x512xf32, #tpu.memory_space<vmem>>, %arg2: memref<8x36xbf16, #tpu.memory_space<vmem>>, %arg3: memref<8x72xbf16, #tpu.memory_space<vmem>>, %arg4: memref<8x4xf32, #tpu.memory_space<vmem>>, %arg5: memref<8x512xf32, #tpu.memory_space<vmem>>) attributes {dimension_semantics = [], scalar_prefetch = 0 : i64, scratch_operands = 0 : i64, tpu.core_type = #tpu.core_type<tc>} {
    %c0 = arith.constant 0 : index
    %c0_0 = arith.constant 0 : index
    %0 = vector.load %arg1[%c0, %c0_0] : memref<8x512xf32, #tpu.memory_space<vmem>>, vector<8x512xf32>
    %c0_1 = arith.constant 0 : index
    %c0_2 = arith.constant 0 : index
    %1 = vector.load %arg4[%c0_1, %c0_2] : memref<8x4xf32, #tpu.memory_space<vmem>>, vector<8x4xf32>
    %c0_3 = arith.constant 0 : index
    %c0_4 = arith.constant 0 : index
    %2 = vector.load %arg0[%c0_3, %c0_4] : memref<4x512xf32, #tpu.memory_space<vmem>>, vector<4x512xf32>
    %c0_5 = arith.constant 0 : index
    %c0_6 = arith.constant 0 : index
    %3 = vector.load %arg2[%c0_5, %c0_6] : memref<8x36xbf16, #tpu.memory_space<vmem>>, vector<8x36xbf16>
    %c17_i32 = arith.constant 17 : i32
    %4 = tpu.dynamic_rotate %2 by %c17_i32 dim 1 : vector<4x512xf32>, i32 -> vector<4x512xf32>
    %5 = vector.extract_strided_slice %0 {offsets = [0, 0], sizes = [1, 512], strides = [1, 1]} : vector<8x512xf32> to vector<1x512xf32>
    %6 = vector.broadcast %5 : vector<1x512xf32> to vector<4x512xf32>
    %7 = arith.mulf %4, %6 : vector<4x512xf32>
    %c16_i32 = arith.constant 16 : i32
    %8 = tpu.dynamic_rotate %2 by %c16_i32 dim 1 : vector<4x512xf32>, i32 -> vector<4x512xf32>
    %9 = vector.extract_strided_slice %0 {offsets = [1, 0], sizes = [1, 512], strides = [1, 1]} : vector<8x512xf32> to vector<1x512xf32>
    %10 = vector.broadcast %9 : vector<1x512xf32> to vector<4x512xf32>
    %11 = arith.mulf %8, %10 : vector<4x512xf32>
    %c15_i32 = arith.constant 15 : i32
    %12 = tpu.dynamic_rotate %2 by %c15_i32 dim 1 : vector<4x512xf32>, i32 -> vector<4x512xf32>
    %13 = vector.extract_strided_slice %0 {offsets = [2, 0], sizes = [1, 512], strides = [1, 1]} : vector<8x512xf32> to vector<1x512xf32>
    %14 = vector.broadcast %13 : vector<1x512xf32> to vector<4x512xf32>
    %15 = arith.mulf %12, %14 : vector<4x512xf32>
    %c1_i32 = arith.constant 1 : i32
    %16 = tpu.dynamic_rotate %2 by %c1_i32 dim 1 : vector<4x512xf32>, i32 -> vector<4x512xf32>
    %17 = vector.extract_strided_slice %0 {offsets = [3, 0], sizes = [1, 512], strides = [1, 1]} : vector<8x512xf32> to vector<1x512xf32>
    %18 = vector.broadcast %17 : vector<1x512xf32> to vector<4x512xf32>
    %19 = arith.mulf %16, %18 : vector<4x512xf32>
    %c511_i32 = arith.constant 511 : i32
    %20 = tpu.dynamic_rotate %2 by %c511_i32 dim 1 : vector<4x512xf32>, i32 -> vector<4x512xf32>
    %21 = vector.extract_strided_slice %0 {offsets = [4, 0], sizes = [1, 512], strides = [1, 1]} : vector<8x512xf32> to vector<1x512xf32>
    %22 = vector.broadcast %21 : vector<1x512xf32> to vector<4x512xf32>
    %23 = arith.mulf %20, %22 : vector<4x512xf32>
    %c497_i32 = arith.constant 497 : i32
    %24 = tpu.dynamic_rotate %2 by %c497_i32 dim 1 : vector<4x512xf32>, i32 -> vector<4x512xf32>
    %25 = vector.extract_strided_slice %0 {offsets = [5, 0], sizes = [1, 512], strides = [1, 1]} : vector<8x512xf32> to vector<1x512xf32>
    %26 = vector.broadcast %25 : vector<1x512xf32> to vector<4x512xf32>
    %27 = arith.mulf %24, %26 : vector<4x512xf32>
    %c496_i32 = arith.constant 496 : i32
    %28 = tpu.dynamic_rotate %2 by %c496_i32 dim 1 : vector<4x512xf32>, i32 -> vector<4x512xf32>
    %29 = vector.extract_strided_slice %0 {offsets = [6, 0], sizes = [1, 512], strides = [1, 1]} : vector<8x512xf32> to vector<1x512xf32>
    %30 = vector.broadcast %29 : vector<1x512xf32> to vector<4x512xf32>
    %31 = arith.mulf %28, %30 : vector<4x512xf32>
    %c495_i32 = arith.constant 495 : i32
    %32 = tpu.dynamic_rotate %2 by %c495_i32 dim 1 : vector<4x512xf32>, i32 -> vector<4x512xf32>
    %33 = vector.extract_strided_slice %0 {offsets = [7, 0], sizes = [1, 512], strides = [1, 1]} : vector<8x512xf32> to vector<1x512xf32>
    %34 = vector.broadcast %33 : vector<1x512xf32> to vector<4x512xf32>
    %35 = arith.mulf %32, %34 : vector<4x512xf32>
    %36 = tpu.concatenate %7, %11, %15, %19, %2, %23, %27, %31, %35 in 0 : vector<4x512xf32>, vector<4x512xf32>, vector<4x512xf32>, vector<4x512xf32>, vector<4x512xf32>, vector<4x512xf32>, vector<4x512xf32>, vector<4x512xf32>, vector<4x512xf32> -> vector<36x512xf32>
    %37 = arith.truncf %36 : vector<36x512xf32> to vector<36x512xbf16>
    %cst = arith.constant dense<0.000000e+00> : vector<8x512xf32>
    %38 = tpu.matmul %3, %37, %cst {dimension_numbers = #tpu.dot_dimension_numbers<[1], [0], [0], [1], [0, 0, 1, 1], [], []>} : vector<8x36xbf16>, vector<36x512xbf16>, vector<8x512xf32> -> vector<8x512xf32>
    %39 = vector.extract_strided_slice %1 {offsets = [0, 0], sizes = [8, 1], strides = [1, 1]} : vector<8x4xf32> to vector<8x1xf32>
    %40 = vector.extract_strided_slice %1 {offsets = [0, 1], sizes = [8, 1], strides = [1, 1]} : vector<8x4xf32> to vector<8x1xf32>
    %cst_7 = arith.constant dense<0.000000e+00> : vector<8xf32>
    %41 = vector.multi_reduction <add>, %38, %cst_7 [1] : vector<8x512xf32> to vector<8xf32>
    %42 = vector.shape_cast %41 : vector<8xf32> to vector<8x1xf32>
    %cst_8 = arith.constant 0.001953125 : f32
    %43 = vector.broadcast %cst_8 : f32 to vector<8x1xf32>
    %44 = arith.mulf %42, %43 : vector<8x1xf32>
    %45 = arith.mulf %38, %38 : vector<8x512xf32>
    %cst_9 = arith.constant dense<0.000000e+00> : vector<8xf32>
    %46 = vector.multi_reduction <add>, %45, %cst_9 [1] : vector<8x512xf32> to vector<8xf32>
    %47 = vector.shape_cast %46 : vector<8xf32> to vector<8x1xf32>
    %cst_10 = arith.constant 0.001953125 : f32
    %48 = vector.broadcast %cst_10 : f32 to vector<8x1xf32>
    %49 = arith.mulf %47, %48 : vector<8x1xf32>
    %50 = arith.mulf %44, %44 : vector<8x1xf32>
    %51 = arith.subf %49, %50 : vector<8x1xf32>
    %cst_11 = arith.constant 9.99999974E-6 : f32
    %52 = vector.broadcast %cst_11 : f32 to vector<8x1xf32>
    %53 = arith.addf %51, %52 : vector<8x1xf32>
    %54 = math.rsqrt %53 : vector<8x1xf32>
    %55 = arith.mulf %39, %54 : vector<8x1xf32>
    %56 = arith.mulf %44, %55 : vector<8x1xf32>
    %57 = arith.subf %40, %56 : vector<8x1xf32>
    %58 = vector.broadcast %55 : vector<8x1xf32> to vector<8x512xf32>
    %59 = arith.mulf %38, %58 : vector<8x512xf32>
    %60 = vector.broadcast %57 : vector<8x1xf32> to vector<8x512xf32>
    %61 = arith.addf %59, %60 : vector<8x512xf32>
    %cst_12 = arith.constant 0.000000e+00 : f32
    %62 = vector.broadcast %cst_12 : f32 to vector<8x512xf32>
    %63 = arith.maximumf %61, %62 : vector<8x512xf32>
    %c0_13 = arith.constant 0 : index
    %c0_14 = arith.constant 0 : index
    %64 = vector.load %arg3[%c0_13, %c0_14] : memref<8x72xbf16, #tpu.memory_space<vmem>>, vector<8x72xbf16>
    %c17_i32_15 = arith.constant 17 : i32
    %65 = tpu.dynamic_rotate %63 by %c17_i32_15 dim 1 : vector<8x512xf32>, i32 -> vector<8x512xf32>
    %66 = vector.extract_strided_slice %0 {offsets = [0, 0], sizes = [1, 512], strides = [1, 1]} : vector<8x512xf32> to vector<1x512xf32>
    %67 = vector.broadcast %66 : vector<1x512xf32> to vector<8x512xf32>
    %68 = arith.mulf %65, %67 : vector<8x512xf32>
    %c16_i32_16 = arith.constant 16 : i32
    %69 = tpu.dynamic_rotate %63 by %c16_i32_16 dim 1 : vector<8x512xf32>, i32 -> vector<8x512xf32>
    %70 = vector.extract_strided_slice %0 {offsets = [1, 0], sizes = [1, 512], strides = [1, 1]} : vector<8x512xf32> to vector<1x512xf32>
    %71 = vector.broadcast %70 : vector<1x512xf32> to vector<8x512xf32>
    %72 = arith.mulf %69, %71 : vector<8x512xf32>
    %c15_i32_17 = arith.constant 15 : i32
    %73 = tpu.dynamic_rotate %63 by %c15_i32_17 dim 1 : vector<8x512xf32>, i32 -> vector<8x512xf32>
    %74 = vector.extract_strided_slice %0 {offsets = [2, 0], sizes = [1, 512], strides = [1, 1]} : vector<8x512xf32> to vector<1x512xf32>
    %75 = vector.broadcast %74 : vector<1x512xf32> to vector<8x512xf32>
    %76 = arith.mulf %73, %75 : vector<8x512xf32>
    %c1_i32_18 = arith.constant 1 : i32
    %77 = tpu.dynamic_rotate %63 by %c1_i32_18 dim 1 : vector<8x512xf32>, i32 -> vector<8x512xf32>
    %78 = vector.extract_strided_slice %0 {offsets = [3, 0], sizes = [1, 512], strides = [1, 1]} : vector<8x512xf32> to vector<1x512xf32>
    %79 = vector.broadcast %78 : vector<1x512xf32> to vector<8x512xf32>
    %80 = arith.mulf %77, %79 : vector<8x512xf32>
    %c511_i32_19 = arith.constant 511 : i32
    %81 = tpu.dynamic_rotate %63 by %c511_i32_19 dim 1 : vector<8x512xf32>, i32 -> vector<8x512xf32>
    %82 = vector.extract_strided_slice %0 {offsets = [4, 0], sizes = [1, 512], strides = [1, 1]} : vector<8x512xf32> to vector<1x512xf32>
    %83 = vector.broadcast %82 : vector<1x512xf32> to vector<8x512xf32>
    %84 = arith.mulf %81, %83 : vector<8x512xf32>
    %c497_i32_20 = arith.constant 497 : i32
    %85 = tpu.dynamic_rotate %63 by %c497_i32_20 dim 1 : vector<8x512xf32>, i32 -> vector<8x512xf32>
    %86 = vector.extract_strided_slice %0 {offsets = [5, 0], sizes = [1, 512], strides = [1, 1]} : vector<8x512xf32> to vector<1x512xf32>
    %87 = vector.broadcast %86 : vector<1x512xf32> to vector<8x512xf32>
    %88 = arith.mulf %85, %87 : vector<8x512xf32>
    %c496_i32_21 = arith.constant 496 : i32
    %89 = tpu.dynamic_rotate %63 by %c496_i32_21 dim 1 : vector<8x512xf32>, i32 -> vector<8x512xf32>
    %90 = vector.extract_strided_slice %0 {offsets = [6, 0], sizes = [1, 512], strides = [1, 1]} : vector<8x512xf32> to vector<1x512xf32>
    %91 = vector.broadcast %90 : vector<1x512xf32> to vector<8x512xf32>
    %92 = arith.mulf %89, %91 : vector<8x512xf32>
    %c495_i32_22 = arith.constant 495 : i32
    %93 = tpu.dynamic_rotate %63 by %c495_i32_22 dim 1 : vector<8x512xf32>, i32 -> vector<8x512xf32>
    %94 = vector.extract_strided_slice %0 {offsets = [7, 0], sizes = [1, 512], strides = [1, 1]} : vector<8x512xf32> to vector<1x512xf32>
    %95 = vector.broadcast %94 : vector<1x512xf32> to vector<8x512xf32>
    %96 = arith.mulf %93, %95 : vector<8x512xf32>
    %97 = tpu.concatenate %68, %72, %76, %80, %63, %84, %88, %92, %96 in 0 : vector<8x512xf32>, vector<8x512xf32>, vector<8x512xf32>, vector<8x512xf32>, vector<8x512xf32>, vector<8x512xf32>, vector<8x512xf32>, vector<8x512xf32>, vector<8x512xf32> -> vector<72x512xf32>
    %98 = arith.truncf %97 : vector<72x512xf32> to vector<72x512xbf16>
    %cst_23 = arith.constant dense<0.000000e+00> : vector<8x512xf32>
    %99 = tpu.matmul %64, %98, %cst_23 {dimension_numbers = #tpu.dot_dimension_numbers<[1], [0], [0], [1], [0, 0, 1, 1], [], []>} : vector<8x72xbf16>, vector<72x512xbf16>, vector<8x512xf32> -> vector<8x512xf32>
    %100 = vector.extract_strided_slice %1 {offsets = [0, 2], sizes = [8, 1], strides = [1, 1]} : vector<8x4xf32> to vector<8x1xf32>
    %101 = vector.extract_strided_slice %1 {offsets = [0, 3], sizes = [8, 1], strides = [1, 1]} : vector<8x4xf32> to vector<8x1xf32>
    %cst_24 = arith.constant dense<0.000000e+00> : vector<8xf32>
    %102 = vector.multi_reduction <add>, %99, %cst_24 [1] : vector<8x512xf32> to vector<8xf32>
    %103 = vector.shape_cast %102 : vector<8xf32> to vector<8x1xf32>
    %cst_25 = arith.constant 0.001953125 : f32
    %104 = vector.broadcast %cst_25 : f32 to vector<8x1xf32>
    %105 = arith.mulf %103, %104 : vector<8x1xf32>
    %106 = arith.mulf %99, %99 : vector<8x512xf32>
    %cst_26 = arith.constant dense<0.000000e+00> : vector<8xf32>
    %107 = vector.multi_reduction <add>, %106, %cst_26 [1] : vector<8x512xf32> to vector<8xf32>
    %108 = vector.shape_cast %107 : vector<8xf32> to vector<8x1xf32>
    %cst_27 = arith.constant 0.001953125 : f32
    %109 = vector.broadcast %cst_27 : f32 to vector<8x1xf32>
    %110 = arith.mulf %108, %109 : vector<8x1xf32>
    %111 = arith.mulf %105, %105 : vector<8x1xf32>
    %112 = arith.subf %110, %111 : vector<8x1xf32>
    %cst_28 = arith.constant 9.99999974E-6 : f32
    %113 = vector.broadcast %cst_28 : f32 to vector<8x1xf32>
    %114 = arith.addf %112, %113 : vector<8x1xf32>
    %115 = math.rsqrt %114 : vector<8x1xf32>
    %116 = arith.mulf %100, %115 : vector<8x1xf32>
    %117 = arith.mulf %105, %116 : vector<8x1xf32>
    %118 = arith.subf %101, %117 : vector<8x1xf32>
    %119 = vector.broadcast %116 : vector<8x1xf32> to vector<8x512xf32>
    %120 = arith.mulf %99, %119 : vector<8x512xf32>
    %121 = vector.broadcast %118 : vector<8x1xf32> to vector<8x512xf32>
    %122 = arith.addf %120, %121 : vector<8x512xf32>
    %cst_29 = arith.constant 0.000000e+00 : f32
    %123 = vector.broadcast %cst_29 : f32 to vector<8x512xf32>
    %124 = arith.maximumf %122, %123 : vector<8x512xf32>
    %c0_30 = arith.constant 0 : index
    %c0_31 = arith.constant 0 : index
    %125 = vector.load %arg5[%c0_30, %c0_31] : memref<8x512xf32, #tpu.memory_space<vmem>>, vector<8x512xf32>
    tpu.vector_store %arg5[%c0_30, %c0_31], %124 {strides = array<i32>} : memref<8x512xf32, #tpu.memory_space<vmem>>, vector<8x512xf32>,
    return
  }
}

</mosaic_0001>

<bundles_post_ra>
// kernel: double_convolution.1
= control target key start
LH: loop header
LB: loop body
LE: loop exit
PB: predicated region body
PF: predicated region fallthrough
CT: control target
= control target key end

     0   :  { %s860_s22 = smov 111   ;;  %s861_s23 = smov 127   ;;  %v1540_v4 = vmov 0   ;;  %v43_v5 = vlaneseq  ;;  %vm382_vm1 = vcmask 1041408   ;;  %vm349_vm5 = vcmask 1043456   ;;  %s1534_s0 = inlined_call_operand.vmem [shape: f32[4,512], index: 0, kind: input, shape index: {}]   ;;  %s1535_s1 = inlined_call_operand.vmem [shape: f32[8,512], index: 1, kind: input, shape index: {}]   ;;  %s1536_s2 = inlined_call_operand.vmem [shape: bf16[8,36], index: 2, kind: input, shape index: {}]   ;;  %s1537_s4 = inlined_call_operand.vmem [shape: f32[8,4], index: 4, kind: input, shape index: {}]   ;;  %s1538_s3 = inlined_call_operand.vmem [shape: bf16[8,72], index: 3, kind: input, shape index: {}]   ;;  %s1539_s5 = inlined_call_operand.vmem [shape: f32[8,512], index: 5, kind: output, shape index: {}]  }
   0x1   :  { %v905_v0 = vld [vmem:[%s1534_s0 + $0x8] sm:$0xff]  ;;  %v910_v1 = vld [vmem:[%s1534_s0] sm:$0xff]  ;;  %s862_s0 = smov 112   ;;  %s863_s24 = smov 113   ;;  %427 = vmatprep.mubr.bf16.mxu0 %v1540_v4  ;;  %468 = vmatprep.mubr.bf16.mxu1 %v1540_v4  ;;  %v1086_v47 = vld [vmem:[%s1535_s1 + $0x10] sm:$0xff]  ;;  %vm378_vm10 = vcmask 293888  }
   0x2   :  { %272 = vrot.lane.b32.xlu1 %v905_v0, %s860_s22  ;;  %268 = vrot.lane.b32.xlu0 %v910_v1, %s860_s22  ;;  %v918_v2 = vcombine.high %v910_v1, %v910_v1  ;;  %v942_v3 = vcombine.high %v905_v0, %v905_v0  ;;  %s864_s25 = smov 16   ;;  %s865_s26 = smov 1   ;;  %v987_v6 = vshrl.u32 %v43_v5, 7  ;;  %v989_v7 = vand.u32 127, %v43_v5  ;;  %v995_v9 = vld [vmem:[%s1535_s1] sm:$0xff]  ;;  %v1000_v10 = vld [vmem:[%s1535_s1 + $0x8] sm:$0xff] }
   0x3   :  { %s866_s27 = smov 17   ;;  %s867_s28 = smov 15   ;;  %850 = vset.pattern.permute.xlu1 %v1540_v4  ;;  %v1091_v48 = vld [vmem:[%s1535_s1 + $0x18] sm:$0xff]  ;;  %vm675_vm11 = vcmask 588800  }
   0x4   :  { %v283_v8 = vsub.s32 7, %v987_v6  ;;  %vm276_vm0 = vcmp.lt.s32.totalorder %v989_v7, 111  ;;  %v1022_v22 = vsub.s32 4, %v987_v6  ;;  %vm177_vm2 = vcmp.lt.s32.totalorder %v989_v7, 127 }
   0x5   :  { %v1030_v27 = vsub.s32 6, %v987_v6  ;;  %vm243_vm3 = vcmp.lt.s32.totalorder %v989_v7, 112  ;;  %v1060_v36 = vsub.s32 5, %v987_v6  ;;  %vm210_vm4 = vcmp.lt.s32.totalorder %v989_v7, 113 }
   0x6   :  { %171 = vrot.lane.b32.xlu1 %v918_v2, %s861_s23  ;;  %270 = vrot.lane.b32.xlu0 %v918_v2, %s860_s22  ;;  %v1008_v13 = vrot.slane %v995_v9, %v283_v8  ;;  %v1011_v14 = vrot.slane %v1000_v10, %v283_v8  ;;  %v1034_v28 = vrot.slane %v1000_v10, %v1022_v22  ;;  %vm78_vm6 = vcmp.lt.s32.totalorder %v989_v7, 16 }
   0x7   :  { %v1038_v29 = vrot.slane %v995_v9, %v1022_v22  ;;  %v1053_v34 = vrot.slane %v1000_v10, %v1030_v27  ;;  %v1057_v35 = vrot.slane %v995_v9, %v1030_v27  ;;  %v1077_v45 = vrot.slane %v995_v9, %v1060_v36 }
   0x8   :  { %v1081_v46 = vrot.slane %v1000_v10, %v1060_v36  ;;  %v1104_v55 = vrot.slane %v1086_v47, %v283_v8  ;;  %v1107_v56 = vrot.slane %v1091_v48, %v283_v8  ;;  %vm144_vm7 = vcmp.lt.s32.totalorder %v989_v7, 1 }
   0x9   :  { %vm45_vm8 = vcmp.lt.s32.totalorder %v989_v7, 17  ;;  %vm111_vm9 = vcmp.lt.s32.totalorder %v989_v7, 15 }
   0xa   :  { %237 = vrot.lane.b32.xlu1 %v918_v2, %s862_s0  ;;  %173 = vrot.lane.b32.xlu0 %v905_v0, %s861_s23 }
   0xe   :  { %169 = vrot.lane.b32.xlu1 %v910_v1, %s861_s23  ;;  %239 = vrot.lane.b32.xlu0 %v905_v0, %s862_s0 }
  0x12   :  { %204 = vrot.lane.b32.xlu1 %v918_v2, %s863_s24  ;;  %235 = vrot.lane.b32.xlu0 %v910_v1, %s862_s0 }
  0x16   :  { %202 = vrot.lane.b32.xlu1 %v910_v1, %s863_s24  ;;  %206 = vrot.lane.b32.xlu0 %v905_v0, %s863_s24 }
  0x1a   :  { %70 = vrot.lane.b32.xlu1 %v910_v1, %s864_s25  ;;  %274 = vrot.lane.b32.xlu0 %v942_v3, %s860_s22 }
  0x1e   :  { %136 = vrot.lane.b32.xlu1 %v910_v1, %s865_s26  ;;  %72 = vrot.lane.b32.xlu0 %v918_v2, %s864_s25 }
  0x22   :  { %175 = vrot.lane.b32.xlu1 %v942_v3, %s861_s23  ;;  %138 = vrot.lane.b32.xlu0 %v918_v2, %s865_s26 }
  0x26   :  { %76 = vrot.lane.b32.xlu1 %v942_v3, %s864_s25  ;;  %241 = vrot.lane.b32.xlu0 %v942_v3, %s862_s0 }
  0x2a   :  { %35 = vrot.lane.b32.xlu1 %v910_v1, %s866_s27  ;;  %142 = vrot.lane.b32.xlu0 %v942_v3, %s865_s26 }
  0x2e   :  { %103 = vrot.lane.b32.xlu1 %v910_v1, %s867_s28  ;;  %37 = vrot.lane.b32.xlu0 %v918_v2, %s866_s27 }
  0x32   :  { %208 = vrot.lane.b32.xlu1 %v942_v3, %s863_s24  ;;  %105 = vrot.lane.b32.xlu0 %v918_v2, %s867_s28 }
  0x36   :  { %109 = vrot.lane.b32.xlu1 %v942_v3, %s867_s28  ;;  %41 = vrot.lane.b32.xlu0 %v942_v3, %s866_s27 }
  0x3a   :  { %140 = vrot.lane.b32.xlu1 %v905_v0, %s865_s26  ;;  %74 = vrot.lane.b32.xlu0 %v905_v0, %s864_s25 }
  0x3e   :  { %107 = vrot.lane.b32.xlu1 %v905_v0, %s867_s28  ;;  %39 = vrot.lane.b32.xlu0 %v905_v0, %s866_s27 }
  0x74   :  { %v1002_v11 = vpop.permute.xlu1 %272  ;;  %v1004_v12 = vpop.permute.xlu0 %268 }
  0x78   :  { %v172_v15 = vpop.permute.xlu1 %171  ;;  %v271_v16 = vpop.permute.xlu0 %270 }
  0x79   :  { %v278_v17 = vsel %vm276_vm0, %v271_v16, %v1002_v11  ;;  %v279_v18 = vsel %vm276_vm0, %v1004_v12, %v271_v16 }
  0x7a   :  { %v297_v19 = vmul.f32 %v1008_v13, %v279_v18  ;;  %v298_v20 = vmul.f32 %v1011_v14, %v278_v17 }
  0x7c   :  { %v238_v21 = vpop.permute.xlu1 %237  ;;  %v1024_v23 = vpop.permute.xlu0 %173  ;;  %v375_v24 = vpack.c.bf16 %v298_v20, %v298_v20  ;;  %v374_v25 = vpack.c.bf16 %v297_v19, %v297_v19 }
  0x7d   :  { %v179_v32 = vsel %vm177_vm2, %v172_v15, %v1024_v23 }
  0x7e   :  { %830 = vmatprep.subr.msk.bf16.mxu0 %vm382_vm1, %v375_v24  ;;  %v384_v26 = vsel %vm382_vm1, %v374_v25, 0  ;;  %v199_v38 = vmul.f32 %v1034_v28, %v179_v32  ;;  %v1132_v32 = vsub.s32 1, %v987_v6 }
  0x7f   :  { %406 = vmatpush1.bf16.msra.mxu0 %v384_v26 }
  0x80   :  { %v1040_v30 = vpop.permute.xlu1 %169  ;;  %v1043_v31 = vpop.permute.xlu0 %239  ;;  %v330_v49 = vrot.slane %v199_v38, 4 }
  0x81   :  { %v180_v33 = vsel %vm177_vm2, %v1040_v30, %v172_v15  ;;  %v245_v37 = vsel %vm243_vm3, %v238_v21, %v1043_v31 }
  0x82   :  { %v198_v39 = vmul.f32 %v1038_v29, %v180_v33  ;;  %v265_v43 = vmul.f32 %v1053_v34, %v245_v37  ;;  %v359_v63 = vsel %vm349_vm5, %v918_v2, %v330_v49  ;;  %v151_v33 = vsub.s32 3, %v987_v6 }
  0x83   :  { %v1159_v49 = vrot.slane %v995_v9, %v1132_v32 }
  0x84   :  { %v205_v40 = vpop.permute.xlu1 %204  ;;  %v1067_v41 = vpop.permute.xlu0 %235  ;;  %v329_v50 = vrot.slane %v198_v39, 4  ;;  %v342_v57 = vrot.slane %v265_v43, 4  ;;  %v1140_v39 = vrot.slane %v1000_v10, %v1132_v32  ;;  %v1152_v43 = vrot.slane %v1091_v48, %v1022_v22 }
  0x85   :  { %v246_v42 = vsel %vm243_vm3, %v1067_v41, %v238_v21  ;;  %1545 = vst [vmem:[#allocation3_spill] sm:$0xff] %v1159_v49 }
  0x86   :  { %v264_v44 = vmul.f32 %v1057_v35, %v246_v42  ;;  %v358_v15 = vsel %vm349_vm5, %v910_v1, %v329_v50  ;;  %1544 = vst [vmem:[#allocation2_spill] sm:$0xff] %v1140_v39  ;;  %v1148_v42 = vsub.s32 0, %v987_v6  ;;  %v1163_v50 = vrot.slane %v1086_v47, %v1030_v27 }
  0x88   :  { %v1093_v51 = vpop.permute.xlu1 %202  ;;  %v1095_v52 = vpop.permute.xlu0 %206  ;;  %v341_v58 = vrot.slane %v264_v44, 4  ;;  %v1155_v44 = vrot.slane %v1000_v10, %v151_v33 }
  0x89   :  { %v213_v53 = vsel %vm210_vm4, %v1093_v51, %v205_v40  ;;  %v212_v54 = vsel %vm210_vm4, %v205_v40, %v1095_v52  ;;  %v1144_v40 = vrot.slane %v1086_v47, %v1022_v22 }
  0x8a   :  { %v231_v59 = vmul.f32 %v1077_v45, %v213_v53  ;;  %v232_v60 = vmul.f32 %v1081_v46, %v212_v54  ;;  %v1173_v54 = vrot.slane %v1091_v48, %v1030_v27  ;;  %v118_v27 = vsub.s32 2, %v987_v6 }
  0x8b   :  { %v1206_v6 = vrot.slane %v1091_v48, %v1060_v36 }
  0x8c   :  { %v71_v61 = vpop.permute.xlu1 %70  ;;  %v275_v62 = vpop.permute.xlu0 %274  ;;  %v363_v5 = vsel %vm349_vm5, %v232_v60, %v342_v57  ;;  %v362_v16 = vsel %vm349_vm5, %v231_v59, %v341_v58  ;;  %v1176_v58 = vrot.slane %v995_v9, %v151_v33 }
  0x8d   :  { %v277_v8 = vsel %vm276_vm0, %v1002_v11, %v275_v62  ;;  %v280_v17 = vsel %vm276_vm0, %v275_v62, %v1004_v12  ;;  %v371_v18 = vpack.c.bf16 %v363_v5, %v359_v63  ;;  %v370_v19 = vpack.c.bf16 %v362_v16, %v358_v15 }
  0x8e   :  { %v299_v20 = vmul.f32 %v1104_v55, %v277_v8  ;;  %v300_v2 = vmul.f32 %v1107_v56, %v280_v17  ;;  %v1196_v63 = vrot.slane %v1000_v10, %v1148_v42  ;;  %v1200_v5 = vrot.slane %v1086_v47, %v1060_v36 }
  0x8f   :  { %407 = vmatprep.subr.bf16.mxu0 %v371_v18 }
  0x90   :  { %v137_v21 = vpop.permute.xlu1 %136  ;;  %408 = vmatpush1.bf16.msra.mxu0 %v370_v19  ;;  %v1125_v1 = vpop.permute.xlu0 %72  ;;  %v377_v24 = vpack.c.bf16 %v300_v2, %v300_v2  ;;  %v376_v25 = vpack.c.bf16 %v299_v20, %v299_v20  ;;  %v1222_v2 = vrot.slane %v1000_v10, %v118_v27 }
  0x91   :  { %v81_v60 = vsel %vm78_vm6, %v71_v61, %v1125_v1 }
  0x92   :  { %832 = vmatprep.subr.msk.bf16.mxu1 %vm382_vm1, %v377_v24  ;;  %v390_v11 = vsel %vm382_vm1, %v376_v25, 0  ;;  %v1225_v24 = vrot.slane %v995_v9, %v118_v27  ;;  %v1232_v25 = vrot.slane %v1086_v47, %v151_v33 }
  0x93   :  { %447 = vmatpush1.bf16.msra.mxu1 %v390_v11  ;;  %v1235_v11 = vrot.slane %v1091_v48, %v151_v33 }
  0x94   :  { %v176_v26 = vpop.permute.xlu1 %175  ;;  %v1129_v12 = vpop.permute.xlu0 %138 }
  0x95   :  { %v178_v53 = vsel %vm177_vm2, %v1024_v23, %v176_v26  ;;  %v181_v22 = vsel %vm177_vm2, %v176_v26, %v1040_v30  ;;  %v147_v23 = vsel %vm144_vm7, %v137_v21, %v1129_v12  ;;  %v1239_v26 = vrot.slane %v1086_v47, %v1132_v32 }
  0x96   :  { %v200_v15 = vmul.f32 %v1144_v40, %v178_v53  ;;  %v166_v16 = vmul.f32 %v1155_v44, %v147_v23 }
  0x98   :  { %v1135_v37 = vpop.permute.xlu1 %76  ;;  %v242_v38 = vpop.permute.xlu0 %241 }
  0x99   :  { %v244_v30 = vsel %vm243_vm3, %v1043_v31, %v242_v38  ;;  %v247_v62 = vsel %vm243_vm3, %v242_v38, %v1067_v41  ;;  %v201_v31 = vmul.f32 %v1152_v43, %v181_v22  ;;  %v100_v41 = vmul.f32 %v1140_v39, %v81_v60 }
  0x9a   :  { %v82_v8 = vsel %vm78_vm6, %v1135_v37, %v71_v61  ;;  %v266_v17 = vmul.f32 %v1163_v50, %v244_v30  ;;  %v267_v20 = vmul.f32 %v1173_v54, %v247_v62  ;;  %v1229_v61 = vrot.slane %v995_v9, %v1148_v42 }
  0x9b   :  { %v331_v38 = vrot.slane %v200_v15, 4  ;;  %v332_v10 = vrot.slane %v201_v31, 4  ;;  %v99_v53 = vmul.f32 %v1159_v49, %v82_v8  ;;  %v306_v9 = vrot.slane %v100_v41, 4 }
  0x9c   :  { %v36_v57 = vpop.permute.xlu1 %35  ;;  %v1178_v59 = vpop.permute.xlu0 %142  ;;  %v318_v60 = vrot.slane %v166_v16, 4  ;;  %v343_v23 = vrot.slane %v266_v17, 4  ;;  %v344_v4 = vrot.slane %v267_v20, 4 }
  0x9d   :  { %v148_v22 = vsel %vm144_vm7, %v1178_v59, %v137_v21  ;;  %v305_v17 = vrot.slane %v99_v53, 4  ;;  %v361_v20 = vsel %vm349_vm5, %v942_v3, %v332_v10 }
  0x9e   :  { %v165_v21 = vmul.f32 %v1176_v58, %v148_v22 }
  0xa0   :  { %v104_v18 = vpop.permute.xlu1 %103  ;;  %v1215_v19 = vpop.permute.xlu0 %37 }
  0xa1   :  { %v48_v36 = vsel %vm45_vm8, %v36_v57, %v1215_v19 }
  0xa2   :  { %v67_v30 = vmul.f32 %v1196_v63, %v48_v36 }
  0xa4   :  { %v209_v62 = vpop.permute.xlu1 %208  ;;  %v106_v33 = vpop.permute.xlu0 %105  ;;  %v351_v22 = vsel %vm349_vm5, %v67_v30, %v306_v9 }
  0xa5   :  { %v211_v39 = vsel %vm210_vm4, %v1095_v52, %v209_v62  ;;  %v214_v15 = vsel %vm210_vm4, %v209_v62, %v1093_v51  ;;  %v114_v31 = vsel %vm111_vm9, %v104_v18, %v106_v33  ;;  %v360_v52 = vsel %vm349_vm5, %v905_v0, %v331_v38 }
  0xa6   :  { %v233_v41 = vmul.f32 %v1200_v5, %v211_v39  ;;  %v234_v16 = vmul.f32 %v1206_v6, %v214_v15  ;;  %v133_v8 = vmul.f32 %v1222_v2, %v114_v31  ;;  %v1264_v51 = vrot.slane %v1091_v48, %v1132_v32 }
  0xa7   :  { %v317_v32 = vrot.slane %v165_v21, 4  ;;  %v1286_v21 = vrot.slane %v1086_v47, %v1148_v42 }
  0xa8   :  { %v110_v36 = vpop.permute.xlu1 %109  ;;  %v42_v62 = vpop.permute.xlu0 %41  ;;  %v355_v39 = vsel %vm349_vm5, %v133_v8, %v318_v60  ;;  %v365_v15 = vsel %vm349_vm5, %v234_v16, %v344_v4  ;;  %v364_v53 = vsel %vm349_vm5, %v233_v41, %v343_v23  ;;  %v1277_v4 = vrot.slane %v1086_v47, %v118_v27 }
  0xa9   :  { %v115_v3 = vsel %vm111_vm9, %v110_v36, %v104_v18  ;;  %v49_v0 = vsel %vm45_vm8, %v42_v62, %v36_v57  ;;  %v367_v38 = vpack.c.bf16 %v355_v39, %v351_v22  ;;  %v373_v10 = vpack.c.bf16 %v365_v15, %v361_v20 }
  0xaa   :  { %v132_v31 = vmul.f32 %v1225_v24, %v115_v3  ;;  %v66_v49 = vmul.f32 %v1229_v61, %v49_v0  ;;  %v372_v9 = vpack.c.bf16 %v364_v53, %v360_v52  ;;  %v1280_v60 = vrot.slane %v1091_v48, %v118_v27  ;;  %v28_v0 = vld [vmem:[%s1536_s2] sm:$0xf] }
  0xab   :  { %409 = vmatprep.subr.bf16.mxu0 %v367_v38  ;;  %448 = vmatprep.subr.bf16.mxu1 %v373_v10  ;;  %v1290_v41 = vrot.slane %v1091_v48, %v1148_v42 }
  0xac   :  { %v141_v18 = vpop.permute.xlu1 %140  ;;  %449 = vmatpush1.bf16.msra.mxu1 %v372_v9  ;;  %v75_v23 = vpop.permute.xlu0 %74  ;;  %v350_v57 = vsel %vm349_vm5, %v66_v49, %v305_v17  ;;  %v354_v30 = vsel %vm349_vm5, %v132_v31, %v317_v32 }
  0xad   :  { %v145_v27 = vsel %vm144_vm7, %v141_v18, %v1178_v59  ;;  %v146_v16 = vsel %vm144_vm7, %v1129_v12, %v141_v18  ;;  %v79_v49 = vsel %vm78_vm6, %v75_v23, %v1135_v37  ;;  %v80_v47 = vsel %vm78_vm6, %v1125_v1, %v75_v23 }
  0xae   :  { %v167_v8 = vmul.f32 %v1232_v25, %v146_v16  ;;  %v168_v48 = vmul.f32 %v1235_v11, %v145_v27  ;;  %v101_v42 = vmul.f32 %v1239_v26, %v80_v47  ;;  %v102_v59 = vmul.f32 %v1264_v51, %v79_v49 }
  0xaf   :  { %v366_v17 = vpack.c.bf16 %v354_v30, %v350_v57  ;;  %v1546_v23 = vmov 0  }
  0xb0   :  { %v319_v20 = vrot.slane %v167_v8, 4  ;;  %v320_v12 = vrot.slane %v168_v48, 4  ;;  %v307_v52 = vrot.slane %v101_v42, 4  ;;  %v308_v22 = vrot.slane %v102_v59, 4  ;;  %v108_v39 = vpop.permute.xlu1 %107  ;;  %v40_v37 = vpop.permute.xlu0 %39 }
  0xb1   :  { %410 = vmatpush1.bf16.msra.mxu0 %v366_v17  ;;  %v112_v1 = vsel %vm111_vm9, %v108_v39, %v110_v36  ;;  %v113_v15 = vsel %vm111_vm9, %v106_v33, %v108_v39  ;;  %v46_v53 = vsel %vm45_vm8, %v40_v37, %v42_v62  ;;  %v47_v3 = vsel %vm45_vm8, %v1215_v19, %v40_v37 }
  0xb2   :  { %v134_v38 = vmul.f32 %v1277_v4, %v113_v15  ;;  %v135_v10 = vmul.f32 %v1280_v60, %v112_v1  ;;  %v68_v36 = vmul.f32 %v1286_v21, %v47_v3  ;;  %v69_v32 = vmul.f32 %v1290_v41, %v46_v53 }
  0xb4   :  { %831 = vmatmul.mubr.msk.bf16.vlgmr.msra.gmra.mxu0 %vm378_vm10, %v28_v0  ;;  %v353_v33 = vsel %vm349_vm5, %v69_v32, %v308_v22  ;;  %v357_v62 = vsel %vm349_vm5, %v135_v10, %v320_v12  ;;  %v352_v19 = vsel %vm349_vm5, %v68_v36, %v307_v52  ;;  %v356_v31 = vsel %vm349_vm5, %v134_v38, %v319_v20 }
  0xb5   :  { %v369_v9 = vpack.c.bf16 %v357_v62, %v353_v33  ;;  %v368_v18 = vpack.c.bf16 %v356_v31, %v352_v19  ;;  %723 = vmatprep.mubr.bf16.mxu0 %v1546_v23  ;;  %v869_v32 = vmov 1   ;;  %v1335_v33 = vld [vmem:[%s1537_s4] sm:$0xff] }
  0xb6   :  { %851 = vset.pattern.permute.xlu0 %v869_v32 }
  0xb7   :  { %450 = vmatprep.subr.bf16.mxu1 %v369_v9 }
  0xb8   :  { %451 = vmatpush1.bf16.msra.mxu1 %v368_v18 }
  0xbb   :  { %833 = vmatmul.mubr.msk.bf16.vlgmr.msra.gmra.mxu1 %vm378_vm10, %v28_v0 }
  0xbc   :  { %764 = vmatprep.mubr.bf16.mxu1 %v1546_v23 }
 0x174   :  { %v429_v57 = vpop.f32.mrf.mxu0 }
 0x175   :  { %v483_v27 = vmul.f32 %v429_v57, %v429_v57 }
 0x176   :  { %v431_v30 = vpop.f32.mrf.mxu0 }
 0x177   :  { %v484_v16 = vmul.f32 %v431_v30, %v431_v30  ;;  %v477_v47 = vadd.f32 %v431_v30, %v429_v57 }
 0x178   :  { %v433_v49 = vpop.f32.mrf.mxu0 }
 0x179   :  { %v487_v17 = vadd.f32 %v484_v16, %v483_v27 }
 0x17a   :  { %v434_v8 = vpop.f32.mrf.mxu0 }
 0x17b   :  { %v470_v48 = vpop.f32.mrf.mxu1 }
 0x17c   :  { %v485_v42 = vmul.f32 %v470_v48, %v470_v48  ;;  %v478_v59 = vadd.f32 %v477_v47, %v470_v48 }
 0x17d   :  { %v472_v20 = vpop.f32.mrf.mxu1 }
 0x17e   :  { %v479_v12 = vadd.f32 %v478_v59, %v472_v20  ;;  %v486_v52 = vmul.f32 %v472_v20, %v472_v20  ;;  %v488_v22 = vadd.f32 %v487_v17, %v485_v42 }
 0x17f   :  { %v474_v39 = vpop.f32.mrf.mxu1 }
 0x180   :  { %480 = vadd.xlane.f32.xlu0 %v479_v12  ;;  %v489_v37 = vadd.f32 %v488_v22, %v486_v52 }
 0x181   :  { %v475_v1 = vpop.f32.mrf.mxu1 }
 0x182   :  { %490 = vadd.xlane.f32.xlu1 %v489_v37 }
 0x209   :  { %v481_v15 = vpop.xlane.xlu0 %480 }
 0x20a   :  { %v482_v53 = vmul.f32 0.001953125, %v481_v15 }
 0x20b   :  { %v491_v3 = vpop.xlane.xlu1 %490 }
 0x20c   :  { %v493_v0 = vmul.f32 %v482_v53, %v482_v53  ;;  %v492_v38 = vmul.f32 0.001953125, %v491_v3 }
 0x20e   :  { %v494_v10 = vsub.f32 %v492_v38, %v493_v0 }
 0x210   :  { %v495_v36 = vadd.f32 1e-05, %v494_v10 }
 0x212   :  { %856 = vrsqrt.f32 %v495_v36 }
 0x21f   :  { %v857_v62 = vpop.eup %856 }
 0x220   :  { %v497_v19 = vmul.f32 %v857_v62, %v1335_v33 }
 0x222   :  { %506 = vperm.xlu1 %850, %v497_v19   ;;  %v498_v31 = vmul.f32 %v497_v19, %v482_v53 }
 0x224   :  { %500 = vrot.lane.b32.xlu0 %v498_v31, %s865_s26 }
 0x296   :  { %v501_v9 = vpop.permute.xlu0 %500 }
 0x297   :  { %v503_v18 = vsub.f32 %v1335_v33, %v501_v9 }
 0x299   :  { %515 = vperm.xlu0 %851, %v503_v18  }
 0x29d   :  { %v507_v23 = vpop.permute.xlu1 %506 }
 0x29e   :  { %v509_v27 = vmul.f32 %v507_v23, %v429_v57  ;;  %v511_v16 = vmul.f32 %v507_v23, %v470_v48  ;;  %v510_v47 = vmul.f32 %v507_v23, %v431_v30  ;;  %v512_v57 = vmul.f32 %v507_v23, %v472_v20 }
 0x314   :  { %v516_v49 = vpop.permute.xlu0 %515 }
 0x315   :  { %v518_v8 = vadd.f32 %v516_v49, %v509_v27  ;;  %v520_v42 = vadd.f32 %v516_v49, %v511_v16  ;;  %v519_v59 = vadd.f32 %v516_v49, %v510_v47  ;;  %v521_v30 = vadd.f32 %v516_v49, %v512_v57 }
 0x317   :  { %v1340_v17 = vmax.f32 %v518_v8, 0.0  ;;  %v1342_v12 = vmax.f32 %v520_v42, 0.0  ;;  %v1348_v52 = vmax.f32 %v519_v59, 0.0  ;;  %v1362_v48 = vmax.f32 %v521_v30, 0.0 }
 0x319   :  { %643 = vrot.lane.b32.xlu0 %v1342_v12, %s860_s22  ;;  %639 = vrot.lane.b32.xlu1 %v1340_v17, %s860_s22 }
 0x31d   :  { %611 = vrot.lane.b32.xlu0 %v1342_v12, %s863_s24  ;;  %641 = vrot.lane.b32.xlu1 %v1348_v52, %s860_s22 }
 0x321   :  { %627 = vrot.lane.b32.xlu0 %v1342_v12, %s862_s0  ;;  %609 = vrot.lane.b32.xlu1 %v1348_v52, %s863_s24 }
 0x325   :  { %607 = vrot.lane.b32.xlu0 %v1340_v17, %s863_s24  ;;  %625 = vrot.lane.b32.xlu1 %v1348_v52, %s862_s0 }
 0x329   :  { %593 = vrot.lane.b32.xlu0 %v1348_v52, %s861_s23  ;;  %645 = vrot.lane.b32.xlu1 %v1362_v48, %s860_s22 }
 0x32d   :  { %613 = vrot.lane.b32.xlu0 %v1362_v48, %s863_s24  ;;  %623 = vrot.lane.b32.xlu1 %v1340_v17, %s862_s0 }
 0x331   :  { %591 = vrot.lane.b32.xlu0 %v1340_v17, %s861_s23  ;;  %595 = vrot.lane.b32.xlu1 %v1342_v12, %s861_s23 }
 0x335   :  { %561 = vrot.lane.b32.xlu0 %v1348_v52, %s867_s28  ;;  %629 = vrot.lane.b32.xlu1 %v1362_v48, %s862_s0 }
 0x339   :  { %577 = vrot.lane.b32.xlu0 %v1348_v52, %s865_s26  ;;  %559 = vrot.lane.b32.xlu1 %v1340_v17, %s867_s28 }
 0x33d   :  { %565 = vrot.lane.b32.xlu0 %v1362_v48, %s867_s28  ;;  %575 = vrot.lane.b32.xlu1 %v1340_v17, %s865_s26 }
 0x341   :  { %527 = vrot.lane.b32.xlu0 %v1340_v17, %s866_s27  ;;  %597 = vrot.lane.b32.xlu1 %v1362_v48, %s861_s23 }
 0x345   :  { %543 = vrot.lane.b32.xlu0 %v1340_v17, %s864_s25  ;;  %581 = vrot.lane.b32.xlu1 %v1362_v48, %s865_s26 }
 0x349   :  { %563 = vrot.lane.b32.xlu0 %v1342_v12, %s867_s28  ;;  %529 = vrot.lane.b32.xlu1 %v1348_v52, %s866_s27 }
 0x34d   :  { %533 = vrot.lane.b32.xlu0 %v1362_v48, %s866_s27  ;;  %545 = vrot.lane.b32.xlu1 %v1348_v52, %s864_s25 }
 0x351   :  { %531 = vrot.lane.b32.xlu0 %v1342_v12, %s866_s27  ;;  %579 = vrot.lane.b32.xlu1 %v1342_v12, %s865_s26 }
 0x355   :  { %549 = vrot.lane.b32.xlu1 %v1362_v48, %s864_s25 }
 0x359   :  { %547 = vrot.lane.b32.xlu1 %v1342_v12, %s864_s25 }
 0x38b   :  { %v644_v20 = vpop.permute.xlu0 %643  ;;  %v640_v22 = vpop.permute.xlu1 %639 }
 0x38f   :  { %v612_v39 = vpop.permute.xlu0 %611  ;;  %v642_v37 = vpop.permute.xlu1 %641 }
 0x390   :  { %v648_v1 = vsel %vm276_vm0, %v642_v37, %v644_v20  ;;  %v649_v15 = vsel %vm276_vm0, %v640_v22, %v642_v37 }
 0x391   :  { %v651_v53 = vmul.f32 %v649_v15, %v1008_v13  ;;  %v652_v3 = vmul.f32 %v648_v1, %v1011_v14 }
 0x393   :  { %v671_v0 = vpack.c.bf16 %v651_v53, %v651_v53  ;;  %v672_v38 = vpack.c.bf16 %v652_v3, %v652_v3  ;;  %v628_v10 = vpop.permute.xlu0 %627  ;;  %v610_v36 = vpop.permute.xlu1 %609 }
 0x394   :  { %v616_v62 = vsel %vm210_vm4, %v610_v36, %v612_v39 }
 0x395   :  { %834 = vmatprep.subr.msk.bf16.mxu0 %vm349_vm5, %v672_v38  ;;  %v680_v32 = vsel %vm349_vm5, %v671_v0, 0  ;;  %v620_v13 = vmul.f32 %v616_v62, %v1081_v46 }
 0x396   :  { %698 = vmatpush1.bf16.msra.mxu0 %v680_v32 }
 0x397   :  { %v608_v19 = vpop.permute.xlu0 %607  ;;  %v626_v31 = vpop.permute.xlu1 %625 }
 0x398   :  { %v632_v9 = vsel %vm243_vm3, %v626_v31, %v628_v10  ;;  %v617_v42 = vsel %vm210_vm4, %v608_v19, %v610_v36 }
 0x399   :  { %v636_v14 = vmul.f32 %v632_v9, %v1053_v34 }
 0x39b   :  { %v594_v18 = vpop.permute.xlu0 %593  ;;  %v646_v23 = vpop.permute.xlu1 %645  ;;  %v668_v27 = vpack.c.bf16 %v636_v14, %v620_v13 }
 0x39c   :  { %v647_v16 = vsel %vm276_vm0, %v644_v20, %v646_v23  ;;  %v650_v49 = vsel %vm276_vm0, %v646_v23, %v640_v22  ;;  %v619_v20 = vmul.f32 %v617_v42, %v1077_v45 }
 0x39d   :  { %v653_v47 = vmul.f32 %v647_v16, %v1104_v55  ;;  %v654_v8 = vmul.f32 %v650_v49, %v1107_v56  ;;  %699 = vmatprep.subr.bf16.mxu0 %v668_v27 }
 0x39f   :  { %v673_v46 = vpack.c.bf16 %v653_v47, %v653_v47  ;;  %v674_v59 = vpack.c.bf16 %v654_v8, %v654_v8  ;;  %v614_v34 = vpop.permute.xlu0 %613  ;;  %v624_v57 = vpop.permute.xlu1 %623 }
 0x3a0   :  { %v633_v30 = vsel %vm243_vm3, %v624_v57, %v626_v31  ;;  %v618_v0 = vsel %vm210_vm4, %v614_v34, %v608_v19 }
 0x3a1   :  { %v635_v37 = vmul.f32 %v633_v30, %v1057_v35  ;;  %836 = vmatprep.subr.msk.bf16.mxu1 %vm349_vm5, %v674_v59  ;;  %v686_v55 = vsel %vm349_vm5, %v673_v46, 0  ;;  %v615_v35 = vsel %vm210_vm4, %v612_v39, %v614_v34  ;;  %v622_v9 = vmul.f32 %v618_v0, %v1206_v6 }
 0x3a2   :  { %739 = vmatpush1.bf16.msra.mxu1 %v686_v55 }
 0x3a3   :  { %v667_v56 = vpack.c.bf16 %v635_v37, %v619_v20  ;;  %v592_v22 = vpop.permute.xlu0 %591  ;;  %v596_v1 = vpop.permute.xlu1 %595 }
 0x3a4   :  { %v601_v15 = vsel %vm177_vm2, %v592_v22, %v594_v18  ;;  %v600_v53 = vsel %vm177_vm2, %v594_v18, %v596_v1 }
 0x3a5   :  { %v603_v3 = vmul.f32 %v601_v15, %v1038_v29  ;;  %v604_v45 = vmul.f32 %v600_v53, %v1034_v28  ;;  %700 = vmatpush1.bf16.msra.mxu0 %v667_v56  ;;  %v621_v28 = vmul.f32 %v615_v35, %v1200_v5 }
 0x3a7   :  { %v663_v38 = vpack.c.bf16 %v603_v3, %v1340_v17  ;;  %v562_v36 = vpop.permute.xlu0 %561  ;;  %v630_v32 = vpop.permute.xlu1 %629  ;;  %v664_v62 = vpack.c.bf16 %v604_v45, %v1348_v52 }
 0x3a8   :  { %v631_v31 = vsel %vm243_vm3, %v628_v10, %v630_v32  ;;  %v634_v29 = vsel %vm243_vm3, %v630_v32, %v624_v57 }
 0x3a9   :  { %v637_v39 = vmul.f32 %v631_v31, %v1163_v50  ;;  %v638_v19 = vmul.f32 %v634_v29, %v1173_v54  ;;  %701 = vmatprep.subr.bf16.mxu0 %v664_v62 }
 0x3aa   :  { %702 = vmatpush1.bf16.msra.mxu0 %v663_v38 }
 0x3ab   :  { %v669_v17 = vpack.c.bf16 %v637_v39, %v621_v28  ;;  %v578_v13 = vpop.permute.xlu0 %577  ;;  %v560_v14 = vpop.permute.xlu1 %559  ;;  %v670_v52 = vpack.c.bf16 %v638_v19, %v622_v9 }
 0x3ac   :  { %v569_v10 = vsel %vm111_vm9, %v560_v14, %v562_v36 }
 0x3ad   :  { %740 = vmatprep.subr.bf16.mxu1 %v670_v52  ;;  %v572_v50 = vmul.f32 %v569_v10, %v1222_v2 }
 0x3ae   :  { %741 = vmatpush1.bf16.msra.mxu1 %v669_v17 }
 0x3af   :  { %v566_v18 = vpop.permute.xlu0 %565  ;;  %v576_v23 = vpop.permute.xlu1 %575 }
 0x3b0   :  { %v585_v5 = vsel %vm144_vm7, %v576_v23, %v578_v13  ;;  %v570_v46 = vsel %vm111_vm9, %v566_v18, %v560_v14 }
 0x3b1   :  { %v588_v54 = vmul.f32 %v585_v5, %v1155_v44  ;;  %v571_v30 = vmul.f32 %v570_v46, %v1225_v24 }
 0x3b3   :  { %v528_v6 = vpop.permute.xlu0 %527  ;;  %v598_v27 = vpop.permute.xlu1 %597  ;;  %v660_v16 = vpack.c.bf16 %v588_v54, %v572_v50 }
 0x3b4   :  { %v599_v49 = vsel %vm177_vm2, %v596_v1, %v598_v27  ;;  %v602_v47 = vsel %vm177_vm2, %v598_v27, %v592_v22  ;;  %v1547_v1 = vld [vmem:[#allocation2_spill] sm:$0xff] }
 0x3b5   :  { %v605_v8 = vmul.f32 %v599_v49, %v1144_v40  ;;  %v606_v42 = vmul.f32 %v602_v47, %v1152_v43  ;;  %703 = vmatprep.subr.bf16.mxu0 %v660_v16 }
 0x3b7   :  { %v665_v2 = vpack.c.bf16 %v605_v8, %v1342_v12  ;;  %v544_v44 = vpop.permute.xlu0 %543  ;;  %v582_v59 = vpop.permute.xlu1 %581  ;;  %v666_v34 = vpack.c.bf16 %v606_v42, %v1362_v48 }
 0x3b8   :  { %v586_v57 = vsel %vm144_vm7, %v582_v59, %v576_v23  ;;  %v526_v23 = vld [vmem:[%s1538_s3] sm:$0xf] }
 0x3b9   :  { %v587_v20 = vmul.f32 %v586_v57, %v1176_v58  ;;  %742 = vmatprep.subr.bf16.mxu1 %v666_v34  ;;  %v870_v57 = vmov 2  }
 0x3ba   :  { %743 = vmatpush1.bf16.msra.mxu1 %v665_v2  ;;  %852 = vset.pattern.permute.xlu1 %v870_v57 }
 0x3bb   :  { %v659_v40 = vpack.c.bf16 %v587_v20, %v571_v30  ;;  %v564_v43 = vpop.permute.xlu0 %563  ;;  %v530_v37 = vpop.permute.xlu1 %529 }
 0x3bc   :  { %v537_v12 = vsel %vm45_vm8, %v528_v6, %v530_v37  ;;  %v567_v58 = vsel %vm111_vm9, %v564_v43, %v566_v18  ;;  %v568_v15 = vsel %vm111_vm9, %v562_v36, %v564_v43 }
 0x3bd   :  { %704 = vmatpush1.bf16.msra.mxu0 %v659_v40  ;;  %v540_v56 = vmul.f32 %v537_v12, %v1196_v63  ;;  %v573_v0 = vmul.f32 %v568_v15, %v1277_v4  ;;  %v574_v63 = vmul.f32 %v567_v58, %v1280_v60  ;;  %v1548_v4 = vld [vmem:[#allocation3_spill] sm:$0xff] }
 0x3bf   :  { %v546_v55 = vpop.permute.xlu1 %545  ;;  %v534_v22 = vpop.permute.xlu0 %533 }
 0x3c0   :  { %v553_v48 = vsel %vm78_vm6, %v544_v44, %v546_v55  ;;  %v538_v36 = vsel %vm45_vm8, %v534_v22, %v528_v6 }
 0x3c1   :  { %v556_v24 = vmul.f32 %v553_v48, %v1547_v1  ;;  %v539_v39 = vmul.f32 %v538_v36, %v1229_v61  ;;  %v871_v48 = vmov 3  }
 0x3c2   :  { %853 = vset.pattern.permute.xlu0 %v871_v48 }
 0x3c3   :  { %v580_v53 = vpop.permute.xlu1 %579  ;;  %v656_v3 = vpack.c.bf16 %v556_v24, %v540_v56  ;;  %v532_v62 = vpop.permute.xlu0 %531 }
 0x3c4   :  { %v583_v45 = vsel %vm144_vm7, %v580_v53, %v582_v59  ;;  %v584_v35 = vsel %vm144_vm7, %v578_v13, %v580_v53 }
 0x3c5   :  { %v589_v38 = vmul.f32 %v584_v35, %v1232_v25  ;;  %v590_v32 = vmul.f32 %v583_v45, %v1235_v11  ;;  %705 = vmatprep.subr.bf16.mxu0 %v656_v3  ;;  %v535_v25 = vsel %vm45_vm8, %v532_v62, %v534_v22  ;;  %v536_v11 = vsel %vm45_vm8, %v530_v37, %v532_v62 }
 0x3c6   :  { %v541_v61 = vmul.f32 %v536_v11, %v1286_v21  ;;  %v542_v52 = vmul.f32 %v535_v25, %v1290_v41 }
 0x3c7   :  { %v661_v31 = vpack.c.bf16 %v589_v38, %v573_v0  ;;  %v550_v29 = vpop.permute.xlu1 %549  ;;  %v662_v28 = vpack.c.bf16 %v590_v32, %v574_v63 }
 0x3c8   :  { %v554_v9 = vsel %vm78_vm6, %v550_v29, %v544_v44 }
 0x3c9   :  { %v555_v19 = vmul.f32 %v554_v9, %v1548_v4  ;;  %744 = vmatprep.subr.bf16.mxu1 %v662_v28 }
 0x3ca   :  { %745 = vmatpush1.bf16.msra.mxu1 %v661_v31 }
 0x3cb   :  { %v655_v60 = vpack.c.bf16 %v555_v19, %v539_v39  ;;  %v548_v17 = vpop.permute.xlu1 %547 }
 0x3cc   :  { %v551_v13 = vsel %vm78_vm6, %v548_v17, %v550_v29  ;;  %v552_v14 = vsel %vm78_vm6, %v546_v55, %v548_v17 }
 0x3cd   :  { %v557_v10 = vmul.f32 %v552_v14, %v1239_v26  ;;  %v558_v18 = vmul.f32 %v551_v13, %v1264_v51  ;;  %706 = vmatpush1.bf16.msra.mxu0 %v655_v60 }
 0x3cf   :  { %v657_v5 = vpack.c.bf16 %v557_v10, %v541_v61  ;;  %v658_v50 = vpack.c.bf16 %v558_v18, %v542_v52 }
 0x3d0   :  { %835 = vmatmul.mubr.msk.bf16.vlgmr.msra.gmra.mxu0 %vm675_vm11, %v526_v23 }
 0x3d1   :  { %746 = vmatprep.subr.bf16.mxu1 %v658_v50 }
 0x3d2   :  { %747 = vmatpush1.bf16.msra.mxu1 %v657_v5 }
 0x3d5   :  { %837 = vmatmul.mubr.msk.bf16.vlgmr.msra.gmra.mxu1 %vm675_vm11, %v526_v23 }
 0x490   :  { %v725_v7 = vpop.f32.mrf.mxu0 }
 0x491   :  { %v779_v54 = vmul.f32 %v725_v7, %v725_v7 }
 0x492   :  { %v727_v21 = vpop.f32.mrf.mxu0 }
 0x493   :  { %v773_v6 = vadd.f32 %v727_v21, %v725_v7  ;;  %v780_v41 = vmul.f32 %v727_v21, %v727_v21 }
 0x494   :  { %v729_v27 = vpop.f32.mrf.mxu0 }
 0x495   :  { %v766_v26 = vpop.f32.mrf.mxu1  ;;  %v783_v16 = vadd.f32 %v780_v41, %v779_v54 }
 0x496   :  { %v781_v51 = vmul.f32 %v766_v26, %v766_v26  ;;  %v730_v49 = vpop.f32.mrf.mxu0  ;;  %v774_v47 = vadd.f32 %v773_v6, %v766_v26 }
 0x497   :  { %v768_v8 = vpop.f32.mrf.mxu1 }
 0x498   :  { %v775_v42 = vadd.f32 %v774_v47, %v768_v8  ;;  %v782_v46 = vmul.f32 %v768_v8, %v768_v8  ;;  %v784_v2 = vadd.f32 %v783_v16, %v781_v51 }
 0x499   :  { %v770_v44 = vpop.f32.mrf.mxu1 }
 0x49a   :  { %776 = vadd.xlane.f32.xlu0 %v775_v42  ;;  %v785_v59 = vadd.f32 %v784_v2, %v782_v46 }
 0x49b   :  { %v771_v34 = vpop.f32.mrf.mxu1 }
 0x49c   :  { %786 = vadd.xlane.f32.xlu1 %v785_v59 }
 0x523   :  { %v777_v30 = vpop.xlane.xlu0 %776 }
 0x524   :  { %v778_v20 = vmul.f32 0.001953125, %v777_v30 }
 0x525   :  { %v787_v40 = vpop.xlane.xlu1 %786 }
 0x526   :  { %v789_v43 = vmul.f32 %v778_v20, %v778_v20  ;;  %v788_v37 = vmul.f32 0.001953125, %v787_v40 }
 0x528   :  { %v790_v12 = vsub.f32 %v788_v37, %v789_v43 }
 0x52a   :  { %v791_v55 = vadd.f32 1e-05, %v790_v12 }
 0x52c   :  { %858 = vrsqrt.f32 %v791_v55 }
 0x539   :  { %v859_v56 = vpop.eup %858 }
 0x53a   :  { %v793_v22 = vmul.f32 %v859_v56, %v1335_v33 }
 0x53c   :  { %802 = vperm.xlu1 %852, %v793_v22   ;;  %v794_v1 = vmul.f32 %v793_v22, %v778_v20 }
 0x53e   :  { %796 = vrot.lane.b32.xlu0 %v794_v1, %s865_s26 }
 0x5b0   :  { %v797_v24 = vpop.permute.xlu0 %796 }
 0x5b1   :  { %v799_v58 = vsub.f32 %v1335_v33, %v797_v24 }
 0x5b3   :  { %811 = vperm.xlu0 %853, %v799_v58  }
 0x5b7   :  { %v803_v15 = vpop.permute.xlu1 %802 }
 0x5b8   :  { %v805_v53 = vmul.f32 %v803_v15, %v725_v7  ;;  %v806_v3 = vmul.f32 %v803_v15, %v727_v21  ;;  %v807_v45 = vmul.f32 %v803_v15, %v766_v26  ;;  %v808_v35 = vmul.f32 %v803_v15, %v768_v8 }
 0x62e   :  { %v812_v0 = vpop.permute.xlu0 %811 }
 0x62f   :  { %v814_v63 = vadd.f32 %v812_v0, %v805_v53  ;;  %v815_v38 = vadd.f32 %v812_v0, %v806_v3  ;;  %v816_v32 = vadd.f32 %v812_v0, %v807_v45  ;;  %v817_v36 = vadd.f32 %v812_v0, %v808_v35 }
 0x631   :  { %v818_v62 = vmax.f32 %v814_v63, 0.0  ;;  %v819_v31 = vmax.f32 %v815_v38, 0.0  ;;  %v820_v29 = vmax.f32 %v816_v32, 0.0  ;;  %v821_v28 = vmax.f32 %v817_v36, 0.0 }
 0x633   :  { %822 = vst [vmem:[%s1539_s5] sm:$0xff] %v818_v62  ;;  %823 = vst [vmem:[%s1539_s5 + $0x8] sm:$0xff] %v819_v31 }
 0x634   :  { %824 = vst [vmem:[%s1539_s5 + $0x10] sm:$0xff] %v820_v29  ;;  %825 = vst [vmem:[%s1539_s5 + $0x18] sm:$0xff] %v821_v28 }

</bundles_post_ra>
